<compile_context>
chip_gen: v7x
topology: tpu7x:2x2x1
jax: 0.10.0
libtpu: 0.0.40
codegen_flags: <defaults>
</compile_context>

<pallas_src>
import functools

import numpy as np

import jax
import jax.numpy as jnp
from jax import lax
from jax.experimental import pallas as pl
from jax.experimental.pallas import tpu as pltpu


# ----------------------------------------------------------------------------
# Static helpers.
# ----------------------------------------------------------------------------
def _interp_matrix(n_in, n_out):
    """(n_out, n_in) bilinear interpolation matrix, align_corners=True."""
    U = np.zeros((n_out, n_in), np.float32)
    if n_in == 1:
        U[:, 0] = 1.0
        return U
    for o in range(n_out):
        src = o * (n_in - 1) / (n_out - 1)
        i0 = int(np.floor(src))
        i0 = min(max(i0, 0), n_in - 1)
        i1 = min(i0 + 1, n_in - 1)
        w = src - i0
        U[o, i0] += 1.0 - w
        U[o, i1] += w
    return U


def _pick_block_batch(n, h):
    """Rows per grid step = nb*h; grow toward the MXU's 256-row sweet spot but
    keep >= 2 grid steps so a v7x chip (2 TensorCores) can split the 'parallel'
    batch axis across both cores."""
    nb = 1
    while (n % (2 * nb) == 0) and (n // (2 * nb) >= 2) and (2 * nb * h <= 256):
        nb *= 2
    return nb


def _prepare_weights(params, H, W, H2, W2, C1, C2, Cout, nb, cdt):
    """Fold 3x3 taps, zero padding and the bilinear 2x width-upsample into
    matrices, then fuse the three kernel-row (dy) matrices along the output
    (lane) dimension so each conv needs a single wide matmul."""
    WCo = W * Cout
    hi = lax.Precision.HIGHEST

    # Horizontal tap selector: Sel[dx, p, w] = 1 iff input column p feeds
    # output column w through kernel column dx ("same" zero padding).
    Sel = np.zeros((3, W, W), np.float32)
    for dx in range(3):
        for w in range(W):
            p = w + dx - 1
            if 0 <= p < W:
                Sel[dx, p, w] = 1.0

    # Bilinear 2x (align_corners=True, matching UpsamplingBilinear2d).
    Uy = _interp_matrix(H2, H)                       # (H, H2)
    Ux = _interp_matrix(W2, W)                       # (W, W2)
    # Width upsample on lane-dense rows (pixel-major, channel-minor):
    # UxB[w2*C2+k, w*C2+c] = Ux[w, w2] * (k == c).
    UxB = np.einsum('wv,kc->vkwc', Ux,
                    np.eye(C2, dtype=np.float32)).reshape(W2 * C2, W * C2)

    sel = jnp.asarray(Sel)
    w1, w2 = params["w1"], params["w2"]              # (3,3,Cin,Cout), (3,3,Cout,Cout)

    # Banded horizontal-tap matrices, one per kernel row dy:
    #   M[dy][p*Cin + k, w*Cout + c] = w[dy, p-w+1, k, c]   (zero outside band).
    m1a = jnp.einsum('xpw,yxkc->ypkwc', sel, w1[:, :, :C1, :],
                     precision=hi).reshape(3, W * C1, WCo)
    m1b = jnp.einsum('xpw,yxkc->ypkwc', sel, w1[:, :, C1:, :],
                     precision=hi).reshape(3, W * C2, WCo)
    # Fold the width-upsample into the inputs2 branch of conv1.
    m1b = jnp.einsum('vu,yuo->yvo', jnp.asarray(UxB), m1b,
                     precision=hi)                                  # (3, W2*C2, WCo)
    m2 = jnp.einsum('xpw,yxkc->ypkwc', sel, w2,
                    precision=hi).reshape(3, WCo, WCo)

    # dy-fusion along output columns: columns [dy*WCo:(dy+1)*WCo] hold tap dy.
    wc1a = jnp.transpose(m1a, (1, 0, 2)).reshape(W * C1, 3 * WCo)
    wc1b = jnp.transpose(m1b, (1, 0, 2)).reshape(W2 * C2, 3 * WCo)
    wc2 = jnp.transpose(m2, (1, 0, 2)).reshape(WCo, 3 * WCo)

    # Block-diagonal height-upsample for nb images stacked per grid step.
    uyb = np.kron(np.eye(nb, dtype=np.float32), Uy)  # (nb*H, nb*H2)

    b1t = jnp.tile(params["b1"], W).reshape(1, WCo)  # f32 bias rows
    b2t = jnp.tile(params["b2"], W).reshape(1, WCo)

    return (wc1a.astype(cdt), wc1b.astype(cdt), wc2.astype(cdt),
            jnp.asarray(uyb, dtype=cdt), b1t, b2t)


# ----------------------------------------------------------------------------
# Fused Pallas kernel: upsample + concat + conv1 + conv2 for nb batch elements.
# ----------------------------------------------------------------------------
def _unet_up_kernel(x1_ref, x2_ref, uy_ref, w1a_ref, w1b_ref, w2_ref,
                    b1_ref, b2_ref, o_ref, *, H, nb):
    f32 = jnp.float32
    M, WCo = o_ref.shape                       # M = nb * H
    cdt = x1_ref.dtype
    zrow = jnp.zeros((1, WCo), f32)

    if nb > 1:
        # Per-image boundary masks so vertical taps never cross batch elements.
        row = lax.broadcasted_iota(jnp.int32, (M, WCo), 0) % H
        not_first = row != 0
        not_last = row != H - 1

    def shift_down(t):
        # dy=0 vertical tap: out[h] += t[h-1], zero at each image's top row.
        s = jnp.concatenate([zrow, t[:-1, :]], axis=0)
        return s if nb == 1 else jnp.where(not_first, s, 0.0)

    def shift_up(t):
        # dy=2 vertical tap: out[h] += t[h+1], zero at each image's bottom row.
        s = jnp.concatenate([t[1:, :], zrow], axis=0)
        return s if nb == 1 else jnp.where(not_last, s, 0.0)

    # Height 2x bilinear upsample of the low-res input done ONCE (the width
    # upsample is already folded into w1b).  Block-diagonal Uy keeps images
    # independent when nb > 1.
    u2 = jnp.dot(uy_ref[...], x2_ref[...],
                 preferred_element_type=f32).astype(cdt)      # (M, W2*C2)

    # conv1: channel-concat is realised as two fused matmuls into the same
    # lane-dense (M, 3*WCo) partial-sum block (one column block per dy).
    p1 = (jnp.dot(x1_ref[...], w1a_ref[...], preferred_element_type=f32)
          + jnp.dot(u2, w1b_ref[...], preferred_element_type=f32))
    acc1 = (b1_ref[...] + p1[:, WCo:2 * WCo]
            + shift_down(p1[:, :WCo])
            + shift_up(p1[:, 2 * WCo:]))

    # conv2: the conv1 activation never leaves on-chip memory.
    p2 = jnp.dot(acc1.astype(cdt), w2_ref[...], preferred_element_type=f32)
    acc2 = (b2_ref[...] + p2[:, WCo:2 * WCo]
            + shift_down(p2[:, :WCo])
            + shift_up(p2[:, 2 * WCo:]))

    o_ref[...] = acc2.astype(o_ref.dtype)      # lane-dense (M, W*Cout) store


# ----------------------------------------------------------------------------
# unetUp forward.
# ----------------------------------------------------------------------------
def unet_up_forward(inputs1, inputs2, params, *,
                    compute_dtype=jnp.bfloat16, block_batch=None):
    """inputs1: (N, H, W, C1) skip connection; inputs2: (N, H/2, W/2, C2)."""
    N, H, W, C1 = inputs1.shape
    _, H2, W2, C2 = inputs2.shape
    Cout = params["b1"].shape[0]
    assert H == 2 * H2 and W == 2 * W2
    assert params["w1"].shape == (3, 3, C1 + C2, Cout)

    nb = block_batch if block_batch is not None else _pick_block_batch(N, H)
    assert N % nb == 0
    WCo = W * Cout

    wc1a, wc1b, wc2, uyb, b1t, b2t = _prepare_weights(
        params, H, W, H2, W2, C1, C2, Cout, nb, compute_dtype)

    # Free, contiguous reshapes to lane-dense rows (pixel-major, channel-minor).
    x1f = inputs1.reshape(N * H, W * C1).astype(compute_dtype)
    x2f = inputs2.reshape(N * H2, W2 * C2).astype(compute_dtype)

    kernel = functools.partial(_unet_up_kernel, H=H, nb=nb)

    out_flat = pl.pallas_call(
        kernel,
        out_shape=jax.ShapeDtypeStruct((N * H, WCo), inputs1.dtype),
        grid_spec=pltpu.PrefetchScalarGridSpec(
            num_scalar_prefetch=0,
            grid=(N // nb,),
            in_specs=[
                pl.BlockSpec((nb * H, W * C1), lambda n: (n, 0)),    # x1 rows
                pl.BlockSpec((nb * H2, W2 * C2), lambda n: (n, 0)),  # x2 rows
                pl.BlockSpec((nb * H, nb * H2), lambda n: (0, 0)),   # Uy (block-diag)
                pl.BlockSpec((W * C1, 3 * WCo), lambda n: (0, 0)),   # conv1 (x1 part)
                pl.BlockSpec((W2 * C2, 3 * WCo), lambda n: (0, 0)),  # conv1 (x2 part)
                pl.BlockSpec((WCo, 3 * WCo), lambda n: (0, 0)),      # conv2
                pl.BlockSpec((1, WCo), lambda n: (0, 0)),            # bias1
                pl.BlockSpec((1, WCo), lambda n: (0, 0)),            # bias2
            ],
            out_specs=pl.BlockSpec((nb * H, WCo), lambda n: (n, 0)),
        ),
        compiler_params=pltpu.CompilerParams(
            dimension_semantics=("parallel",)),
        # At real sizes also raise vmem_limit_bytes and W-tile the banded
        # weights (see scaling note in the header); unnecessary at demo shapes.
    )(x1f, x2f, uyb, wc1a, wc1b, wc2, b1t, b2t)

    return out_flat.reshape(N, H, W, Cout)


def make_params(key, in_size, out_size):
    k1, k2, k3, k4 = jax.random.split(key, 4)
    scale1 = 1.0 / jnp.sqrt(9.0 * in_size)
    scale2 = 1.0 / jnp.sqrt(9.0 * out_size)
    return {
        "w1": jax.random.uniform(k1, (3, 3, in_size, out_size), jnp.float32,
                                 -scale1, scale1),
        "b1": jax.random.uniform(k2, (out_size,), jnp.float32, -scale1, scale1),
        "w2": jax.random.uniform(k3, (3, 3, out_size, out_size), jnp.float32,
                                 -scale2, scale2),
        "b2": jax.random.uniform(k4, (out_size,), jnp.float32, -scale2, scale2),
    }


# ----------------------------------------------------------------------------
# Pure-JAX reference (gather-based upsample + lax.conv) for sanity checks.
# ----------------------------------------------------------------------------
def _upsample_bilinear_2x_ref(x_nhwc):
    N, H, W, C = x_nhwc.shape
    Ho, Wo = 2 * H, 2 * W

    def coords(n_in, n_out):
        if n_in == 1:
            src = jnp.zeros((n_out,), jnp.float32)
        else:
            src = jnp.arange(n_out, dtype=jnp.float32) * (n_in - 1) / (n_out - 1)
        i0 = jnp.clip(jnp.floor(src).astype(jnp.int32), 0, n_in - 1)
        i1 = jnp.minimum(i0 + 1, n_in - 1)
        return i0, i1, src - i0.astype(jnp.float32)

    y0, y1, wy = coords(H, Ho)
    x0, x1, wx = coords(W, Wo)
    r0 = x_nhwc[:, y0, :, :]
    r1 = x_nhwc[:, y1, :, :]
    top = r0[:, :, x0, :] * (1.0 - wx)[None, None, :, None] + \
          r0[:, :, x1, :] * wx[None, None, :, None]
    bot = r1[:, :, x0, :] * (1.0 - wx)[None, None, :, None] + \
          r1[:, :, x1, :] * wx[None, None, :, None]
    return top * (1.0 - wy)[None, :, None, None] + bot * wy[None, :, None, None]


def _reference(inputs1, inputs2, params):
    up2 = _upsample_bilinear_2x_ref(inputs2)
    cat = jnp.concatenate([inputs1, up2], axis=-1)
    dn = ("NHWC", "HWIO", "NHWC")
    hi = lax.Precision.HIGHEST
    y = lax.conv_general_dilated(cat, params["w1"], (1, 1), "SAME",
                                 dimension_numbers=dn,
                                 precision=hi) + params["b1"]
    y = lax.conv_general_dilated(y, params["w2"], (1, 1), "SAME",
                                 dimension_numbers=dn,
                                 precision=hi) + params["b2"]
    return y


if __name__ == "__main__":
    key = jax.random.PRNGKey(0)
    k_in1, k_in2, k_par = jax.random.split(key, 3)

    N, H, W = 2, 16, 16
    C1, C2 = 8, 8                   # skip channels, upsampled channels
    in_size, out_size = C1 + C2, 8  # matches unetUp(in_size, out_size)

    inputs1 = jax.random.normal(k_in1, (N, H, W, C1), jnp.float32)
    inputs2 = jax.random.normal(k_in2, (N, H // 2, W // 2, C2), jnp.float32)
    params = make_params(k_par, in_size, out_size)

    ref = jax.block_until_ready(_reference(inputs1, inputs2, params))

    # 1) f32-operand path: tight check of weight folding / tap-shift indexing.
    out_f32 = jax.block_until_ready(
        jax.jit(functools.partial(unet_up_forward, compute_dtype=jnp.float32))(
            inputs1, inputs2, params))
    assert out_f32.shape == (N, H, W, out_size)
    assert jnp.allclose(out_f32, ref, rtol=2e-3, atol=2e-3), "f32 path mismatch"

    # 2) Default fast path: bf16 operands, f32 accumulation (looser tolerance
    #    accounts only for bf16 operand quantization).
    out = jax.block_until_ready(jax.jit(unet_up_forward)(inputs1, inputs2, params))
    assert out.shape == (N, H, W, out_size)
    assert jnp.allclose(out, ref, rtol=2e-2, atol=2e-2), "bf16 path mismatch"

    print("KERNEL_OK")
</pallas_src>

<mosaic_0001>
module attributes {stable_mosaic.version = 11 : i64} {
  func.func @_unet_up_kernel(%arg0: i32, %arg1: memref<16x128xf32, #tpu.memory_space<vmem>>, %arg2: memref<8x64xf32, #tpu.memory_space<vmem>>, %arg3: memref<16x8xf32, #tpu.memory_space<vmem>>, %arg4: memref<128x384xf32, #tpu.memory_space<vmem>>, %arg5: memref<64x384xf32, #tpu.memory_space<vmem>>, %arg6: memref<128x384xf32, #tpu.memory_space<vmem>>, %arg7: memref<1x128xf32, #tpu.memory_space<vmem>>, %arg8: memref<1x128xf32, #tpu.memory_space<vmem>>, %arg9: memref<16x128xf32, #tpu.memory_space<vmem>>) attributes {dimension_semantics = [#tpu.dimension_semantics<parallel>], iteration_bounds = array<i64: 2>, scalar_prefetch = 0 : i64, scratch_operands = 0 : i64, tpu.core_type = #tpu.core_type<tc>, window_params = [{transform_indices = @transform_0, window_bounds = array<i64: 16, 128>}, {transform_indices = @transform_1, window_bounds = array<i64: 8, 64>}, {pipeline_mode = #tpu.pipeline_mode<synchronous>, transform_indices = @transform_2, window_bounds = array<i64: 16, 8>}, {pipeline_mode = #tpu.pipeline_mode<synchronous>, transform_indices = @transform_3, window_bounds = array<i64: 128, 384>}, {pipeline_mode = #tpu.pipeline_mode<synchronous>, transform_indices = @transform_4, window_bounds = array<i64: 64, 384>}, {pipeline_mode = #tpu.pipeline_mode<synchronous>, transform_indices = @transform_5, window_bounds = array<i64: 128, 384>}, {pipeline_mode = #tpu.pipeline_mode<synchronous>, transform_indices = @transform_6, window_bounds = array<i64: 1, 128>}, {pipeline_mode = #tpu.pipeline_mode<synchronous>, transform_indices = @transform_7, window_bounds = array<i64: 1, 128>}, {transform_indices = @transform_8, window_bounds = array<i64: 16, 128>}]} {
    %cst = arith.constant 0.000000e+00 : f32
    %0 = vector.broadcast %cst : f32 to vector<1x128xf32>
    %c0 = arith.constant 0 : index
    %c0_0 = arith.constant 0 : index
    %1 = vector.load %arg3[%c0, %c0_0] : memref<16x8xf32, #tpu.memory_space<vmem>>, vector<16x8xf32>
    %c0_1 = arith.constant 0 : index
    %c0_2 = arith.constant 0 : index
    %2 = vector.load %arg2[%c0_1, %c0_2] : memref<8x64xf32, #tpu.memory_space<vmem>>, vector<8x64xf32>
    %cst_3 = arith.constant dense<0.000000e+00> : vector<16x64xf32>
    %3 = tpu.matmul %1, %2, %cst_3 {dimension_numbers = #tpu.dot_dimension_numbers<[1], [0], [0], [1], [0, 0, 1, 1], [], []>} : vector<16x8xf32>, vector<8x64xf32>, vector<16x64xf32> -> vector<16x64xf32>
    %c0_4 = arith.constant 0 : index
    %c0_5 = arith.constant 0 : index
    %4 = vector.load %arg1[%c0_4, %c0_5] : memref<16x128xf32, #tpu.memory_space<vmem>>, vector<16x128xf32>
    %c0_6 = arith.constant 0 : index
    %c0_7 = arith.constant 0 : index
    %5 = vector.load %arg4[%c0_6, %c0_7] : memref<128x384xf32, #tpu.memory_space<vmem>>, vector<128x384xf32>
    %cst_8 = arith.constant dense<0.000000e+00> : vector<16x384xf32>
    %6 = tpu.matmul %4, %5, %cst_8 {dimension_numbers = #tpu.dot_dimension_numbers<[1], [0], [0], [1], [0, 0, 1, 1], [], []>} : vector<16x128xf32>, vector<128x384xf32>, vector<16x384xf32> -> vector<16x384xf32>
    %c0_9 = arith.constant 0 : index
    %c0_10 = arith.constant 0 : index
    %7 = vector.load %arg5[%c0_9, %c0_10] : memref<64x384xf32, #tpu.memory_space<vmem>>, vector<64x384xf32>
    %cst_11 = arith.constant dense<0.000000e+00> : vector<16x384xf32>
    %8 = tpu.matmul %3, %7, %cst_11 {dimension_numbers = #tpu.dot_dimension_numbers<[1], [0], [0], [1], [0, 0, 1, 1], [], []>} : vector<16x64xf32>, vector<64x384xf32>, vector<16x384xf32> -> vector<16x384xf32>
    %9 = arith.addf %6, %8 : vector<16x384xf32>
    %c0_12 = arith.constant 0 : index
    %c0_13 = arith.constant 0 : index
    %10 = vector.load %arg7[%c0_12, %c0_13] : memref<1x128xf32, #tpu.memory_space<vmem>>, vector<1x128xf32>
    %11 = vector.extract_strided_slice %9 {offsets = [0, 128], sizes = [16, 128], strides = [1, 1]} : vector<16x384xf32> to vector<16x128xf32>
    %12 = vector.broadcast %10 : vector<1x128xf32> to vector<16x128xf32>
    %13 = arith.addf %12, %11 : vector<16x128xf32>
    %14 = vector.extract_strided_slice %9 {offsets = [0, 0], sizes = [16, 128], strides = [1, 1]} : vector<16x384xf32> to vector<16x128xf32>
    %15 = vector.extract_strided_slice %14 {offsets = [0, 0], sizes = [15, 128], strides = [1, 1]} : vector<16x128xf32> to vector<15x128xf32>
    %16 = tpu.concatenate %0, %15 in 0 : vector<1x128xf32>, vector<15x128xf32> -> vector<16x128xf32>
    %17 = arith.addf %13, %16 : vector<16x128xf32>
    %18 = vector.extract_strided_slice %9 {offsets = [0, 256], sizes = [16, 128], strides = [1, 1]} : vector<16x384xf32> to vector<16x128xf32>
    %19 = vector.extract_strided_slice %18 {offsets = [1, 0], sizes = [15, 128], strides = [1, 1]} : vector<16x128xf32> to vector<15x128xf32>
    %20 = tpu.concatenate %19, %0 in 0 : vector<15x128xf32>, vector<1x128xf32> -> vector<16x128xf32>
    %21 = arith.addf %17, %20 : vector<16x128xf32>
    %c0_14 = arith.constant 0 : index
    %c0_15 = arith.constant 0 : index
    %22 = vector.load %arg6[%c0_14, %c0_15] : memref<128x384xf32, #tpu.memory_space<vmem>>, vector<128x384xf32>
    %cst_16 = arith.constant dense<0.000000e+00> : vector<16x384xf32>
    %23 = tpu.matmul %21, %22, %cst_16 {dimension_numbers = #tpu.dot_dimension_numbers<[1], [0], [0], [1], [0, 0, 1, 1], [], []>} : vector<16x128xf32>, vector<128x384xf32>, vector<16x384xf32> -> vector<16x384xf32>
    %c0_17 = arith.constant 0 : index
    %c0_18 = arith.constant 0 : index
    %24 = vector.load %arg8[%c0_17, %c0_18] : memref<1x128xf32, #tpu.memory_space<vmem>>, vector<1x128xf32>
    %25 = vector.extract_strided_slice %23 {offsets = [0, 128], sizes = [16, 128], strides = [1, 1]} : vector<16x384xf32> to vector<16x128xf32>
    %26 = vector.broadcast %24 : vector<1x128xf32> to vector<16x128xf32>
    %27 = arith.addf %26, %25 : vector<16x128xf32>
    %28 = vector.extract_strided_slice %23 {offsets = [0, 0], sizes = [16, 128], strides = [1, 1]} : vector<16x384xf32> to vector<16x128xf32>
    %29 = vector.extract_strided_slice %28 {offsets = [0, 0], sizes = [15, 128], strides = [1, 1]} : vector<16x128xf32> to vector<15x128xf32>
    %30 = tpu.concatenate %0, %29 in 0 : vector<1x128xf32>, vector<15x128xf32> -> vector<16x128xf32>
    %31 = arith.addf %27, %30 : vector<16x128xf32>
    %32 = vector.extract_strided_slice %23 {offsets = [0, 256], sizes = [16, 128], strides = [1, 1]} : vector<16x384xf32> to vector<16x128xf32>
    %33 = vector.extract_strided_slice %32 {offsets = [1, 0], sizes = [15, 128], strides = [1, 1]} : vector<16x128xf32> to vector<15x128xf32>
    %34 = tpu.concatenate %33, %0 in 0 : vector<15x128xf32>, vector<1x128xf32> -> vector<16x128xf32>
    %35 = arith.addf %31, %34 : vector<16x128xf32>
    %c0_19 = arith.constant 0 : index
    %c0_20 = arith.constant 0 : index
    %36 = vector.load %arg9[%c0_19, %c0_20] : memref<16x128xf32, #tpu.memory_space<vmem>>, vector<16x128xf32>
    tpu.vector_store %arg9[%c0_19, %c0_20], %35 {strides = array<i32>} : memref<16x128xf32, #tpu.memory_space<vmem>>, vector<16x128xf32>,
    return
  }
  func.func @transform_0(%arg0: i32) -> (i32, i32) {
    %c0_i32 = arith.constant 0 : i32
    %c0_i32_0 = arith.constant 0 : i32
    return %arg0, %c0_i32 : i32, i32
  }
  func.func @transform_1(%arg0: i32) -> (i32, i32) {
    %c0_i32 = arith.constant 0 : i32
    %c0_i32_0 = arith.constant 0 : i32
    return %arg0, %c0_i32 : i32, i32
  }
  func.func @transform_2(%arg0: i32) -> (i32, i32) {
    %c0_i32 = arith.constant 0 : i32
    %c0_i32_0 = arith.constant 0 : i32
    %c0_i32_1 = arith.constant 0 : i32
    return %c0_i32, %c0_i32_0 : i32, i32
  }
  func.func @transform_3(%arg0: i32) -> (i32, i32) {
    %c0_i32 = arith.constant 0 : i32
    %c0_i32_0 = arith.constant 0 : i32
    %c0_i32_1 = arith.constant 0 : i32
    return %c0_i32, %c0_i32_0 : i32, i32
  }
  func.func @transform_4(%arg0: i32) -> (i32, i32) {
    %c0_i32 = arith.constant 0 : i32
    %c0_i32_0 = arith.constant 0 : i32
    %c0_i32_1 = arith.constant 0 : i32
    return %c0_i32, %c0_i32_0 : i32, i32
  }
  func.func @transform_5(%arg0: i32) -> (i32, i32) {
    %c0_i32 = arith.constant 0 : i32
    %c0_i32_0 = arith.constant 0 : i32
    %c0_i32_1 = arith.constant 0 : i32
    return %c0_i32, %c0_i32_0 : i32, i32
  }
  func.func @transform_6(%arg0: i32) -> (i32, i32) {
    %c0_i32 = arith.constant 0 : i32
    %c0_i32_0 = arith.constant 0 : i32
    %c0_i32_1 = arith.constant 0 : i32
    return %c0_i32, %c0_i32_0 : i32, i32
  }
  func.func @transform_7(%arg0: i32) -> (i32, i32) {
    %c0_i32 = arith.constant 0 : i32
    %c0_i32_0 = arith.constant 0 : i32
    %c0_i32_1 = arith.constant 0 : i32
    return %c0_i32, %c0_i32_0 : i32, i32
  }
  func.func @transform_8(%arg0: i32) -> (i32, i32) {
    %c0_i32 = arith.constant 0 : i32
    %c0_i32_0 = arith.constant 0 : i32
    return %arg0, %c0_i32 : i32, i32
  }
}

</mosaic_0001>

<bundles_post_ra>
// kernel: tile.13
= control target key start
LH: loop header
LB: loop body
LE: loop exit
PB: predicated region body
PF: predicated region fallthrough
CT: control target
= control target key end

     0   :  { %s28_s0 = inlined_call_operand.vmem [shape: f32[8], index: 0, kind: input, shape index: {}]   ;;  %s29_s1 = inlined_call_operand.vmem [shape: f32[16,8], index: 1, kind: output, shape index: {}]  }
   0x1   :  { %v4_v0 = vld [vmem:[%s28_s0] ss:$0 sm:$0xff] }
   0x2   :  { %5 = vst [vmem:[%s29_s1] sm:$0xff] %v4_v0  ;;  %8 = vst [vmem:[%s29_s1 + $0x8] sm:$0xff] %v4_v0 }

// kernel: tile.14
= control target key start
LH: loop header
LB: loop body
LE: loop exit
PB: predicated region body
PF: predicated region fallthrough
CT: control target
= control target key end

     0   :  { %s131_s10 = smov 120   ;;  %s132_s11 = smov 104   ;;  %vm3_vm0 = vcmask 64512   ;;  %vm9_vm1 = vcmask 1048512   ;;  %vm15_vm2 = vcmask 982912   ;;  %vm21_vm3 = vcmask 917312   ;;  %s207_s0 = inlined_call_operand.vmem [shape: f32[16,8], index: 0, kind: input, shape index: {}]   ;;  %s208_s1 = inlined_call_operand.vmem [shape: f32[1,128], index: 1, kind: output, shape index: {}]  }
   0x1   :  { %v101_v0 = vld [vmem:[%s207_s0 + $0xf] sm:$0x1]   ;;  %v103_v1 = vld [vmem:[%s207_s0 + $0xd] sm:$0x1]   ;;  %v102_v2 = vld [vmem:[%s207_s0 + $0xe] sm:$0x1]  }
   0x2   :  { %7 = vrot.lane.b32.xlu0 %v101_v0, %s131_s10  ;;  %19 = vrot.lane.b32.xlu1 %v103_v1, %s132_s11  ;;  %v104_v3 = vld [vmem:[%s207_s0 + $0xc] sm:$0x1]   ;;  %s133_s16 = smov 112   ;;  %s134_s17 = smov 96   ;;  %v105_v4 = vld [vmem:[%s207_s0 + $0xb] sm:$0x1]  }
   0x3   :  { %v106_v5 = vld [vmem:[%s207_s0 + $0xa] sm:$0x1]   ;;  %v2_v6 = vld [vmem:[%s207_s0] sm:$0x1]   ;;  %s135_s24 = smov 88   ;;  %s136_s25 = smov 80  }
   0x4   :  { %4 = vst.msk [vmem:[#allocation0] sm:$0x1] %vm3_vm0, %v2_v6   ;;  %v107_v7 = vld [vmem:[%s207_s0 + $0x9] sm:$0x1]   ;;  %v108_v8 = vld [vmem:[%s207_s0 + $0x8] sm:$0x1]  }
   0x5   :  { %s137_s30 = smov 72   ;;  %s138_s2 = smov 64   ;;  %v109_v9 = vld [vmem:[%s207_s0 + $0x7] sm:$0x1]   ;;  %v110_v10 = vld [vmem:[%s207_s0 + $0x6] sm:$0x1]  }
   0x6   :  { %13 = vrot.lane.b32.xlu0 %v102_v2, %s133_s16  ;;  %25 = vrot.lane.b32.xlu1 %v104_v3, %s134_s17  ;;  %s139_s7 = smov 56   ;;  %s140_s8 = smov 48   ;;  %v111_v11 = vld [vmem:[%s207_s0 + $0x5] sm:$0x1]   ;;  %v112_v12 = vld [vmem:[%s207_s0 + $0x4] sm:$0x1]  }
   0x7   :  { %s141_s13 = smov 40   ;;  %s142_s14 = smov 32   ;;  %v113_v13 = vld [vmem:[%s207_s0 + $0x3] sm:$0x1]   ;;  %v114_v14 = vld [vmem:[%s207_s0 + $0x2] sm:$0x1]  }
   0x8   :  { %s143_s19 = smov 24   ;;  %s144_s20 = smov 16   ;;  %v115_v15 = vld [vmem:[%s207_s0 + $0x1] sm:$0x1]   ;;  %vm27_vm4 = vcmask 851712   ;;  %vm33_vm5 = vcmask 786112  }
   0x9   :  { %s145_s0 = smov 8   ;;  %vm39_vm6 = vcmask 720512   ;;  %vm45_vm7 = vcmask 654912   ;;  %vm51_vm8 = vcmask 589312   ;;  %vm57_vm9 = vcmask 523712  }
   0xa   :  { %31 = vrot.lane.b32.xlu0 %v105_v4, %s135_s24  ;;  %37 = vrot.lane.b32.xlu1 %v106_v5, %s136_s25  ;;  %vm63_vm10 = vcmask 458112   ;;  %vm69_vm11 = vcmask 392512   ;;  %vm75_vm12 = vcmask 326912   ;;  %vm81_vm13 = vcmask 261312  }
   0xb   :  { %vm87_vm14 = vcmask 195712   ;;  %vm93_vm15 = vcmask 130112  }
   0xe   :  { %43 = vrot.lane.b32.xlu0 %v107_v7, %s137_s30  ;;  %49 = vrot.lane.b32.xlu1 %v108_v8, %s138_s2 }
  0x12   :  { %55 = vrot.lane.b32.xlu0 %v109_v9, %s139_s7  ;;  %61 = vrot.lane.b32.xlu1 %v110_v10, %s140_s8 }
  0x16   :  { %67 = vrot.lane.b32.xlu0 %v111_v11, %s141_s13  ;;  %73 = vrot.lane.b32.xlu1 %v112_v12, %s142_s14 }
  0x1a   :  { %79 = vrot.lane.b32.xlu0 %v113_v13, %s143_s19  ;;  %85 = vrot.lane.b32.xlu1 %v114_v14, %s144_s20 }
  0x1e   :  { %91 = vrot.lane.b32.xlu0 %v115_v15, %s145_s0 }
  0x74   :  { %v8_v16 = vpop.permute.xlu0 %7   ;;  %v20_v17 = vpop.permute.xlu1 %19  }
  0x75   :  { %10 = vst.msk [vmem:[#allocation0] sm:$0x1] %vm9_vm1, %v8_v16  }
  0x78   :  { %v14_v18 = vpop.permute.xlu0 %13   ;;  %v26_v19 = vpop.permute.xlu1 %25  }
  0x79   :  { %16 = vst.msk [vmem:[#allocation0] sm:$0x1] %vm15_vm2, %v14_v18  }
  0x7a   :  { %22 = vst.msk [vmem:[#allocation0] sm:$0x1] %vm21_vm3, %v20_v17  }
  0x7b   :  { %28 = vst.msk [vmem:[#allocation0] sm:$0x1] %vm27_vm4, %v26_v19  }
  0x7c   :  { %v32_v20 = vpop.permute.xlu0 %31   ;;  %v38_v21 = vpop.permute.xlu1 %37  }
  0x7d   :  { %34 = vst.msk [vmem:[#allocation0] sm:$0x1] %vm33_vm5, %v32_v20  }
  0x7e   :  { %40 = vst.msk [vmem:[#allocation0] sm:$0x1] %vm39_vm6, %v38_v21  }
  0x80   :  { %v44_v22 = vpop.permute.xlu0 %43   ;;  %v50_v23 = vpop.permute.xlu1 %49  }
  0x81   :  { %46 = vst.msk [vmem:[#allocation0] sm:$0x1] %vm45_vm7, %v44_v22  }
  0x82   :  { %52 = vst.msk [vmem:[#allocation0] sm:$0x1] %vm51_vm8, %v50_v23  }
  0x84   :  { %v56_v24 = vpop.permute.xlu0 %55   ;;  %v62_v25 = vpop.permute.xlu1 %61  }
  0x85   :  { %58 = vst.msk [vmem:[#allocation0] sm:$0x1] %vm57_vm9, %v56_v24  }
  0x86   :  { %64 = vst.msk [vmem:[#allocation0] sm:$0x1] %vm63_vm10, %v62_v25  }
  0x88   :  { %v68_v26 = vpop.permute.xlu0 %67   ;;  %v74_v27 = vpop.permute.xlu1 %73  }
  0x89   :  { %70 = vst.msk [vmem:[#allocation0] sm:$0x1] %vm69_vm11, %v68_v26  }
  0x8a   :  { %76 = vst.msk [vmem:[#allocation0] sm:$0x1] %vm75_vm12, %v74_v27  }
  0x8c   :  { %v80_v28 = vpop.permute.xlu0 %79   ;;  %v86_v29 = vpop.permute.xlu1 %85  }
  0x8d   :  { %82 = vst.msk [vmem:[#allocation0] sm:$0x1] %vm81_vm13, %v80_v28  }
  0x8e   :  { %88 = vst.msk [vmem:[#allocation0] sm:$0x1] %vm87_vm14, %v86_v29  }
  0x90   :  { %v92_v30 = vpop.permute.xlu0 %91  }
  0x91   :  { %94 = vst.msk [vmem:[#allocation0] sm:$0x1] %vm93_vm15, %v92_v30  }
  0x98   :  { %v98_v31 = vld [vmem:[#allocation0] sm:$0x1] }
  0x99   :  { %100 = vst [vmem:[%s208_s1] sm:$0x1] %v98_v31 }

// kernel: unet_up_forward.1
= control target key start
LH: loop header
LB: loop body
LE: loop exit
PB: predicated region body
PF: predicated region fallthrough
CT: control target
= control target key end

     0   :  { %s1518_s27 = smov 0   ;;  %s1950_s0 = inlined_call_operand.vmem [shape: f32[32,128], index: 0, kind: input, shape index: {}]   ;;  %s1951_s1 = inlined_call_operand.vmem [shape: f32[16,64], index: 1, kind: input, shape index: {}]   ;;  %s1952_s2 = inlined_call_operand.vmem [shape: f32[16,8], index: 2, kind: input, shape index: {}]   ;;  %s1953_s3 = inlined_call_operand.vmem [shape: f32[128,384], index: 3, kind: input, shape index: {}]   ;;  %s1954_s4 = inlined_call_operand.vmem [shape: f32[64,384], index: 4, kind: input, shape index: {}]   ;;  %s1955_s5 = inlined_call_operand.vmem [shape: f32[128,384], index: 5, kind: input, shape index: {}]   ;;  %s1956_s6 = inlined_call_operand.vmem [shape: f32[1,128], index: 6, kind: input, shape index: {}]   ;;  %s1957_s7 = inlined_call_operand.vmem [shape: f32[1,128], index: 7, kind: input, shape index: {}]   ;;  %s1958_s8 = inlined_call_operand.vmem [shape: f32[32,128], index: 8, kind: output, shape index: {}]  }
   0x1 LB: > { %s1524_s28 = sadd.s32 4294967295, %s1470_s27   ;;  %p1130_p0 = scmp.ge.s32.totalorder %s1470_s27, 1  ;;  %s1470_s27 = sphi %s1518_s27, %s18_s27  }
   0x2   : > { %p272_p1 = scmp.lt.s32.totalorder %s1470_s27, 3 }
   0x4   : > { %p273_p2 = pnand %p1130_p0, %p272_p1 }
   0x5   : > { %p316_p3 = scmp.lt.s32.totalorder (!%p273_p2), %s1524_s28, 1  ;;  %v326_v0 = vld [vmem:[%s1952_s2] sm:$0xff] (!%p273_p2)  ;;  %vm329_vm0 = vcmask (!%p273_p2), 64512   ;;  %v462_v1 = vld [vmem:[%s1954_s4 + $0x8] sm:$0xff] (!%p273_p2)  ;;  %v464_v4 = vld [vmem:[%s1954_s4 + $0x18] sm:$0xff] (!%p273_p2)  ;;  %v1472_v44 = vmov (!%p273_p2), 0.0  }
   0x6   : > { %276 = sbr.rel (%p273_p2) target bundleno = 708 (0x2c4), region = 52  ;;  %1197 = vmatprep.mubr.msk.f32.mxu0 (!%p273_p2), %vm329_vm0, %v326_v0  ;;  %v465_v2 = vld [vmem:[%s1954_s4 + $0x20] sm:$0xff] (!%p273_p2)  ;;  %v463_v7 = vld [vmem:[%s1954_s4 + $0x10] sm:$0xff] (!%p273_p2)  ;;  %v466_v8 = vld [vmem:[%s1954_s4 + $0x28] sm:$0xff] (!%p273_p2)  ;;  %556 = vmatprep.mubr.f32.mxu1 (!%p273_p2), %v1472_v44  ;;  %s1131_s12 = sshll.u32 (!%p273_p2), %s1524_s28, 1  ;;  %vm485_vm1 = vcmask (!%p273_p2), 523264  }
   0x7   : > { %v461_v3 = vld [vmem:[%s1954_s4] sm:$0xff] (!%p273_p2)  ;;  %v1289_v5 = vpack.c.bf16 (!%p273_p2), %v465_v2, %v462_v1  ;;  %v468_v9 = vld [vmem:[%s1954_s4 + $0x38] sm:$0xff] (!%p273_p2)  ;;  %v471_v10 = vld [vmem:[%s1954_s4 + $0x50] sm:$0xff] (!%p273_p2)  ;;  %v1305_v17 = vpack.c.bf16 (!%p273_p2), %v466_v8, %v463_v7  ;;  %p311_p4 = scmp.lt.s32.totalorder (!%p273_p2), %s1131_s12, 3  ;;  %vm807_vm2 = vcmask (!%p273_p2), 1040384   ;;  %vm818_vm3 = vcmask (!%p273_p2), 1046528  }
   0x8   : > { %v1291_v6 = vpack.c.bf16 (!%p273_p2), %v464_v4, %v461_v3  ;;  %v467_v11 = vld [vmem:[%s1954_s4 + $0x30] sm:$0xff] (!%p273_p2)  ;;  %v470_v12 = vld [vmem:[%s1954_s4 + $0x48] sm:$0xff] (!%p273_p2)  ;;  %v1293_v13 = vpack.c.bf16 (!%p273_p2), %v471_v10, %v468_v9  ;;  %v469_v14 = vld [vmem:[%s1954_s4 + $0x40] sm:$0xff] (!%p273_p2) }
   0x9   : > { %1290 = vmatprep.subr.bf16.mxu1 (!%p273_p2), %v1289_v5  ;;  %v472_v15 = vld [vmem:[%s1954_s4 + $0x58] sm:$0xff] (!%p273_p2)  ;;  %v474_v16 = vld [vmem:[%s1954_s4 + $0x68] sm:$0xff] (!%p273_p2)  ;;  %v477_v18 = vld [vmem:[%s1954_s4 + $0x80] sm:$0xff] (!%p273_p2)  ;;  %v1295_v21 = vpack.c.bf16 (!%p273_p2), %v470_v12, %v467_v11 }
   0xa   : > { %1292 = vmatpush1.bf16.msra.mxu1 (!%p273_p2), %v1291_v6  ;;  %v327_v20 = vld [vmem:[%s1952_s2 + $0x8] sm:$0xff] (!%p273_p2)  ;;  %v1309_v22 = vpack.c.bf16 (!%p273_p2), %v472_v15, %v469_v14  ;;  %v1297_v23 = vpack.c.bf16 (!%p273_p2), %v477_v18, %v474_v16  ;;  %v473_v24 = vld [vmem:[%s1954_s4 + $0x60] sm:$0xff] (!%p273_p2)  ;;  %v476_v25 = vld [vmem:[%s1954_s4 + $0x78] sm:$0xff] (!%p273_p2) }
   0xb   : > { %1294 = vmatprep.subr.bf16.mxu1 (!%p273_p2), %v1293_v13  ;;  %v475_v26 = vld [vmem:[%s1954_s4 + $0x70] sm:$0xff] (!%p273_p2)  ;;  %v478_v27 = vld [vmem:[%s1954_s4 + $0x88] sm:$0xff] (!%p273_p2)  ;;  %v480_v28 = vld [vmem:[%s1954_s4 + $0x98] sm:$0xff] (!%p273_p2)  ;;  %v1299_v30 = vpack.c.bf16 (!%p273_p2), %v476_v25, %v473_v24 }
   0xc   : > { %v483_v29 = vld [vmem:[%s1954_s4 + $0xb0] sm:$0xff] (!%p273_p2)  ;;  %v1313_v31 = vpack.c.bf16 (!%p273_p2), %v478_v27, %v475_v26  ;;  %v482_v34 = vld [vmem:[%s1954_s4 + $0xa8] sm:$0xff] (!%p273_p2)  ;;  %v481_v35 = vld [vmem:[%s1954_s4 + $0xa0] sm:$0xff] (!%p273_p2) }
   0xd   : > { %s317_s17 = scalar_select %p316_p3, %s1524_s28, 1  ;;  %v1301_v32 = vpack.c.bf16 %v483_v29, %v480_v28  ;;  %v479_v33 = vld [vmem:[%s1954_s4 + $0x90] sm:$0xff]  ;;  %v484_v36 = vld [vmem:[%s1954_s4 + $0xb8] sm:$0xff]  ;;  %v414_v39 = vld [vmem:[%s1953_s3 + $0x8] sm:$0xff] }
   0xe   : > { %1296 = vmatpush1.bf16.msra.mxu1 %v1295_v21  ;;  %v1303_v37 = vpack.c.bf16 %v482_v34, %v479_v33  ;;  %v1317_v38 = vpack.c.bf16 %v484_v36, %v481_v35  ;;  %v417_v40 = vld [vmem:[%s1953_s3 + $0x20] sm:$0xff]  ;;  %v415_v42 = vld [vmem:[%s1953_s3 + $0x10] sm:$0xff]  ;;  %v418_v43 = vld [vmem:[%s1953_s3 + $0x28] sm:$0xff]  ;;  %s1960_s12 = smov (!%p311_p4, %s1131_s12), 3 }
   0xf   : > { %s1133_s10 = sshll.u32 %s317_s17, 3  ;;  %1298 = vmatprep.subr.bf16.mxu1 %v1297_v23  ;;  %v1321_v41 = vpack.c.bf16 %v417_v40, %v414_v39  ;;  %v1353_v45 = vpack.c.bf16 %v418_v43, %v415_v42  ;;  %v413_v46 = vld [vmem:[%s1953_s3] sm:$0xff]  ;;  %v416_v47 = vld [vmem:[%s1953_s3 + $0x18] sm:$0xff]  ;;  %v423_v49 = vld [vmem:[%s1953_s3 + $0x50] sm:$0xff] }
  0x10   : > { %s319_s20 = scalar_lea.vmem %s1951_s1, %s1133_s10  ;;  %v420_v48 = vld [vmem:[%s1953_s3 + $0x38] sm:$0xff]  ;;  %v421_v50 = vld [vmem:[%s1953_s3 + $0x40] sm:$0xff]  ;;  %v1323_v52 = vpack.c.bf16 %v416_v47, %v413_v46  ;;  %v419_v54 = vld [vmem:[%s1953_s3 + $0x30] sm:$0xff] }
  0x11   : > { %v328_v19 = vld [vmem:[%s319_s20] sm:$0xff]  ;;  %s1132_s20 = sshll.u32 %s1960_s12, 3  ;;  %v424_v51 = vld [vmem:[%s1953_s3 + $0x58] sm:$0xff]  ;;  %v422_v55 = vld [vmem:[%s1953_s3 + $0x48] sm:$0xff]  ;;  %v1325_v57 = vpack.c.bf16 %v423_v49, %v420_v48 }
  0x12   : > { %1195 = vmatprep.subr.mxu0 %v328_v19  ;;  %1300 = vmatpush1.bf16.msra.mxu1 %v1299_v30  ;;  %s1659_s11 = scalar_lea.vmem %s1950_s0, %s1132_s20  ;;  %v1357_v58 = vpack.c.bf16 %v424_v51, %v421_v50  ;;  %v426_v59 = vld [vmem:[%s1953_s3 + $0x68] sm:$0xff]  ;;  %v429_v60 = vld [vmem:[%s1953_s3 + $0x80] sm:$0xff]  ;;  %v427_v61 = vld [vmem:[%s1953_s3 + $0x70] sm:$0xff]  ;;  %v1327_v63 = vpack.c.bf16 %v422_v55, %v419_v54 }
  0x13   : > { %1196 = vmatpush3.msra.mxu0 %v328_v19  ;;  %1302 = vmatprep.subr.bf16.mxu1 %v1301_v32  ;;  %v430_v62 = vld [vmem:[%s1953_s3 + $0x88] sm:$0xff]  ;;  %v1677_v0 = vld [vmem:[%s1659_s11] sm:$0xff]  ;;  %v1329_v1 = vpack.c.bf16 %v429_v60, %v426_v59  ;;  %v428_v3 = vld [vmem:[%s1953_s3 + $0x78] sm:$0xff] }
  0x14   : > { %1198 = vmatmul.mubr.msk.f32.vlgmr.msra.gmra.mrb[0].mxu0 %vm329_vm0, %v327_v20  ;;  %1306 = vmatprep.subr.bf16.mxu0 %v1305_v17  ;;  %v425_v2 = vld [vmem:[%s1953_s3 + $0x60] sm:$0xff]  ;;  %v1361_v4 = vpack.c.bf16 %v430_v62, %v427_v61  ;;  %v432_v5 = vld [vmem:[%s1953_s3 + $0x98] sm:$0xff]  ;;  %v435_v6 = vld [vmem:[%s1953_s3 + $0xb0] sm:$0xff] }
  0x15   : > { %1308 = vmatpush3.bf16.msra.mxu0 %v1305_v17  ;;  %v433_v7 = vld [vmem:[%s1953_s3 + $0xa0] sm:$0xff]  ;;  %v436_v8 = vld [vmem:[%s1953_s3 + $0xb8] sm:$0xff]  ;;  %v1331_v9 = vpack.c.bf16 %v428_v3, %v425_v2  ;;  %v1333_v10 = vpack.c.bf16 %v435_v6, %v432_v5  ;;  %v431_v11 = vld [vmem:[%s1953_s3 + $0x90] sm:$0xff] }
  0x16   : > { %1310 = vmatprep.subr.bf16.mxu0 %v1309_v22  ;;  %1304 = vmatpush1.bf16.msra.mxu1 %v1303_v37  ;;  %v434_v12 = vld [vmem:[%s1953_s3 + $0xa8] sm:$0xff]  ;;  %v1365_v13 = vpack.c.bf16 %v436_v8, %v433_v7  ;;  %v441_v15 = vld [vmem:[%s1953_s3 + $0xe0] sm:$0xff]  ;;  %v439_v16 = vld [vmem:[%s1953_s3 + $0xd0] sm:$0xff] }
  0x17   : > { %1322 = vmatprep.subr.bf16.mxu1 %v1321_v41  ;;  %v438_v14 = vld [vmem:[%s1953_s3 + $0xc8] sm:$0xff]  ;;  %v1335_v18 = vpack.c.bf16 %v434_v12, %v431_v11  ;;  %v437_v20 = vld [vmem:[%s1953_s3 + $0xc0] sm:$0xff]  ;;  %v440_v21 = vld [vmem:[%s1953_s3 + $0xd8] sm:$0xff] }
  0x18   : > { %v442_v17 = vld [vmem:[%s1953_s3 + $0xe8] sm:$0xff]  ;;  %v1337_v19 = vpack.c.bf16 %v441_v15, %v438_v14  ;;  %v444_v23 = vld [vmem:[%s1953_s3 + $0xf8] sm:$0xff]  ;;  %v447_v24 = vld [vmem:[%s1953_s3 + $0x110] sm:$0xff]  ;;  %v1339_v27 = vpack.c.bf16 %v440_v21, %v437_v20 }
  0x19   : > { %1312 = vmatpush3.bf16.msra.mxu0 %v1309_v22  ;;  %v1369_v22 = vpack.c.bf16 %v442_v17, %v439_v16  ;;  %v445_v25 = vld [vmem:[%s1953_s3 + $0x100] sm:$0xff]  ;;  %v448_v26 = vld [vmem:[%s1953_s3 + $0x118] sm:$0xff]  ;;  %v1341_v28 = vpack.c.bf16 %v447_v24, %v444_v23  ;;  %v443_v29 = vld [vmem:[%s1953_s3 + $0xf0] sm:$0xff] }
  0x1a   : > { %1314 = vmatprep.subr.bf16.mxu0 %v1313_v31  ;;  %v446_v30 = vld [vmem:[%s1953_s3 + $0x108] sm:$0xff]  ;;  %v453_v33 = vld [vmem:[%s1953_s3 + $0x140] sm:$0xff]  ;;  %v451_v34 = vld [vmem:[%s1953_s3 + $0x130] sm:$0xff] }
  0x1b   : > { %v450_v32 = vld [vmem:[%s1953_s3 + $0x128] sm:$0xff]  ;;  %v1343_v36 = vpack.c.bf16 %v446_v30, %v443_v29  ;;  %v452_v39 = vld [vmem:[%s1953_s3 + $0x138] sm:$0xff]  ;;  %v459_v42 = vld [vmem:[%s1953_s3 + $0x170] sm:$0xff] }
  0x1c   : > { %v454_v35 = vld [vmem:[%s1953_s3 + $0x148] sm:$0xff]  ;;  %v1345_v37 = vpack.c.bf16 %v453_v33, %v450_v32  ;;  %v456_v41 = vld [vmem:[%s1953_s3 + $0x158] sm:$0xff]  ;;  %v457_v43 = vld [vmem:[%s1953_s3 + $0x160] sm:$0xff] }
  0x1d   : > { %1316 = vmatpush3.bf16.msra.mxu0 %v1313_v31  ;;  %v1373_v31 = vpack.c.bf16 %v448_v26, %v445_v25  ;;  %v1377_v40 = vpack.c.bf16 %v454_v35, %v451_v34  ;;  %v1349_v47 = vpack.c.bf16 %v459_v42, %v456_v41  ;;  %v455_v48 = vld [vmem:[%s1953_s3 + $0x150] sm:$0xff]  ;;  %v458_v49 = vld [vmem:[%s1953_s3 + $0x168] sm:$0xff]  ;;  %v834_v59 = vld [vmem:[%s1955_s5 + $0x38] sm:$0xff] }
  0x1e   : > { %1318 = vmatprep.subr.bf16.mxu0 %v1317_v38  ;;  %v828_v51 = vld [vmem:[%s1955_s5 + $0x8] sm:$0xff]  ;;  %v1351_v55 = vpack.c.bf16 %v458_v49, %v455_v48  ;;  %v837_v61 = vld [vmem:[%s1955_s5 + $0x50] sm:$0xff]  ;;  %v835_v62 = vld [vmem:[%s1955_s5 + $0x40] sm:$0xff] }
  0x1f   : > { %v832_v54 = vld [vmem:[%s1955_s5 + $0x28] sm:$0xff]  ;;  %v1389_v3 = vpack.c.bf16 %v837_v61, %v834_v59  ;;  %v843_v8 = vld [vmem:[%s1955_s5 + $0x80] sm:$0xff]  ;;  %v846_v14 = vld [vmem:[%s1955_s5 + $0x98] sm:$0xff] }
  0x20   : > { %v836_v5 = vld [vmem:[%s1955_s5 + $0x48] sm:$0xff]  ;;  %v839_v12 = vld [vmem:[%s1955_s5 + $0x60] sm:$0xff]  ;;  %v849_v16 = vld [vmem:[%s1955_s5 + $0xb0] sm:$0xff] }
  0x21   : > { %1320 = vmatpush3.bf16.msra.mxu0 %v1317_v38  ;;  %v449_v38 = vld [vmem:[%s1953_s3 + $0x120] sm:$0xff]  ;;  %v840_v6 = vld [vmem:[%s1955_s5 + $0x68] sm:$0xff]  ;;  %v1397_v20 = vpack.c.bf16 %v849_v16, %v846_v14  ;;  %v845_v21 = vld [vmem:[%s1955_s5 + $0x90] sm:$0xff] }
  0x22   : > { %1354 = vmatprep.subr.bf16.mxu0 %v1353_v45  ;;  %v1347_v46 = vpack.c.bf16 %v452_v39, %v449_v38  ;;  %v847_v17 = vld [vmem:[%s1955_s5 + $0xa0] sm:$0xff]  ;;  %v852_v23 = vld [vmem:[%s1955_s5 + $0xc8] sm:$0xff]  ;;  %v853_v26 = vld [vmem:[%s1955_s5 + $0xd0] sm:$0xff] }
  0x23   : > { %v855_v25 = vld [vmem:[%s1955_s5 + $0xe0] sm:$0xff]  ;;  %v858_v33 = vld [vmem:[%s1955_s5 + $0xf8] sm:$0xff]  ;;  %v861_v34 = vld [vmem:[%s1955_s5 + $0x110] sm:$0xff] }
  0x24   : > { %v1401_v29 = vpack.c.bf16 %v855_v25, %v852_v23  ;;  %v851_v30 = vld [vmem:[%s1955_s5 + $0xc0] sm:$0xff]  ;;  %v860_v38 = vld [vmem:[%s1955_s5 + $0x108] sm:$0xff] }
  0x25   : > { %v867_v41 = vld [vmem:[%s1955_s5 + $0x140] sm:$0xff] }
  0x26   : > { %v859_v42 = vld [vmem:[%s1955_s5 + $0x100] sm:$0xff] }
  0x27   : > { %v871_v59 = vld [vmem:[%s1955_s5 + $0x160] sm:$0xff] }
  0xe7   : > { %v1199_v53 = vpop.f32.mrb[0].mxu0 }
  0xe8   : > { %v402_v56 = vpop.f32.mrb[1].mxu0 }
  0xe9   : > { %1138 = vmatmul.mubr.msk.f32.vlgmr.msra.gmra.mrb[0].mxu1 %vm485_vm1, %v402_v56  ;;  %1216 = vmatprep.mubr.msk.f32.mxu0 %vm485_vm1, %v402_v56 }
  0xea   : > { %1324 = vmatpush1.bf16.msra.mxu1 %v1323_v52  ;;  %1217 = vmatmul.mubr.msk.f32.vlgmr.msra.gmra.mrb[2].mxu0 %vm485_vm1, %v1199_v53  ;;  %v831_v52 = vld [vmem:[%s1955_s5 + $0x20] sm:$0xff] }
  0xeb   : > { %1356 = vmatpush3.bf16.msra.mxu0 %v1353_v45  ;;  %562 = vmatprep.mubr.f32.mxu1 %v1472_v44  ;;  %v460_v45 = vld [vmem:[%s1953_s3 + $0x178] sm:$0xff]  ;;  %v1385_v56 = vpack.c.bf16 %v831_v52, %v828_v51  ;;  %v873_v51 = vld [vmem:[%s1955_s5 + $0x170] sm:$0xff] }
  0xec   : > { %1326 = vmatprep.subr.bf16.mxu1 %v1325_v57  ;;  %1358 = vmatprep.subr.bf16.mxu0 %v1357_v58  ;;  %v1381_v50 = vpack.c.bf16 %v460_v45, %v457_v43  ;;  %v827_v57 = vld [vmem:[%s1955_s5] sm:$0xff]  ;;  %v862_v45 = vld [vmem:[%s1955_s5 + $0x118] sm:$0xff] }
  0xed   : > { %1139 = vmatmul.mubr.msk.f32.gmra.mrb[2].mxu1 %vm485_vm1, %v1199_v53  ;;  %1251 = vmatprep.mubr.f32.mxu0 %v1677_v0  ;;  %v829_v53 = vld [vmem:[%s1955_s5 + $0x10] sm:$0xff]  ;;  %v1437_v48 = vpack.c.bf16 %v862_v45, %v859_v42 }
  0xee   : > { %1328 = vmatpush1.bf16.msra.mxu1 %v1327_v63  ;;  %708 = vmatprep.mubr.f32.mxu1 %v1472_v44  ;;  %v1417_v60 = vpack.c.bf16 %v832_v54, %v829_v53  ;;  %v838_v63 = vld [vmem:[%s1955_s5 + $0x58] sm:$0xff]  ;;  %v865_v53 = vld [vmem:[%s1955_s5 + $0x130] sm:$0xff]  ;;  %v868_v54 = vld [vmem:[%s1955_s5 + $0x148] sm:$0xff] }
  0xef   : > { %1360 = vmatpush3.bf16.msra.mxu0 %v1357_v58  ;;  %1330 = vmatprep.subr.bf16.mxu1 %v1329_v1  ;;  %v830_v58 = vld [vmem:[%s1955_s5 + $0x18] sm:$0xff]  ;;  %v412_v1 = vld [vmem:[%s1659_s11 + $0x8] sm:$0xff]  ;;  %v1421_v7 = vpack.c.bf16 %v838_v63, %v835_v62  ;;  %v1142_v62 = vld [vmem:[%s1956_s6] ss:$0 sm:$0xff]  ;;  %s324_s11 = scalar_lea.vmem %s1958_s8, %s1132_s20 }
  0xf0   : > { %1362 = vmatprep.subr.bf16.mxu0 %v1361_v4  ;;  %v1387_v2 = vpack.c.bf16 %v830_v58, %v827_v57  ;;  %v872_v57 = vld [vmem:[%s1955_s5 + $0x168] sm:$0xff] }
  0xf2   : > { %1332 = vmatpush1.bf16.msra.mxu1 %v1331_v9  ;;  %v841_v9 = vld [vmem:[%s1955_s5 + $0x70] sm:$0xff] }
  0xf3   : > { %1364 = vmatpush3.bf16.msra.mxu0 %v1361_v4  ;;  %1334 = vmatprep.subr.bf16.mxu1 %v1333_v10  ;;  %v833_v4 = vld [vmem:[%s1955_s5 + $0x30] sm:$0xff]  ;;  %v844_v10 = vld [vmem:[%s1955_s5 + $0x88] sm:$0xff] }
  0xf4   : > { %1366 = vmatprep.subr.bf16.mxu0 %v1365_v13  ;;  %v1391_v11 = vpack.c.bf16 %v836_v5, %v833_v4  ;;  %v1425_v15 = vpack.c.bf16 %v844_v10, %v841_v9 }
  0xf6   : > { %1336 = vmatpush1.bf16.msra.mxu1 %v1335_v18  ;;  %v850_v18 = vld [vmem:[%s1955_s5 + $0xb8] sm:$0xff] }
  0xf7   : > { %1368 = vmatpush3.bf16.msra.mxu0 %v1365_v13  ;;  %1338 = vmatprep.subr.bf16.mxu1 %v1337_v19  ;;  %v842_v13 = vld [vmem:[%s1955_s5 + $0x78] sm:$0xff]  ;;  %v1429_v24 = vpack.c.bf16 %v850_v18, %v847_v17 }
  0xf8   : > { %1370 = vmatprep.subr.bf16.mxu0 %v1369_v22  ;;  %v1395_v19 = vpack.c.bf16 %v842_v13, %v839_v12 }
  0xfa   : > { %1340 = vmatpush1.bf16.msra.mxu1 %v1339_v27  ;;  %v856_v27 = vld [vmem:[%s1955_s5 + $0xe8] sm:$0xff] }
  0xfb   : > { %1372 = vmatpush3.bf16.msra.mxu0 %v1369_v22  ;;  %1342 = vmatprep.subr.bf16.mxu1 %v1341_v28  ;;  %v848_v22 = vld [vmem:[%s1955_s5 + $0xa8] sm:$0xff]  ;;  %v1433_v32 = vpack.c.bf16 %v856_v27, %v853_v26 }
  0xfc   : > { %1374 = vmatprep.subr.bf16.mxu0 %v1373_v31  ;;  %v1399_v28 = vpack.c.bf16 %v848_v22, %v845_v21 }
  0xfe   : > { %1344 = vmatpush1.bf16.msra.mxu1 %v1343_v36  ;;  %v1405_v36 = vpack.c.bf16 %v861_v34, %v858_v33 }
  0xff   : > { %1376 = vmatpush3.bf16.msra.mxu0 %v1373_v31  ;;  %1346 = vmatprep.subr.bf16.mxu1 %v1345_v37  ;;  %v854_v31 = vld [vmem:[%s1955_s5 + $0xd8] sm:$0xff]  ;;  %v857_v37 = vld [vmem:[%s1955_s5 + $0xf0] sm:$0xff] }
 0x100   : > { %1378 = vmatprep.subr.bf16.mxu0 %v1377_v40  ;;  %v1403_v35 = vpack.c.bf16 %v854_v31, %v851_v30  ;;  %v1407_v39 = vpack.c.bf16 %v860_v38, %v857_v37 }
 0x102   : > { %1348 = vmatpush1.bf16.msra.mxu1 %v1347_v46  ;;  %v863_v46 = vld [vmem:[%s1955_s5 + $0x120] sm:$0xff] }
 0x103   : > { %1380 = vmatpush3.bf16.msra.mxu0 %v1377_v40  ;;  %1350 = vmatprep.subr.bf16.mxu1 %v1349_v47  ;;  %v864_v40 = vld [vmem:[%s1955_s5 + $0x128] sm:$0xff]  ;;  %v866_v47 = vld [vmem:[%s1955_s5 + $0x138] sm:$0xff] }
 0x104   : > { %1382 = vmatprep.subr.bf16.mxu0 %v1381_v50  ;;  %v1409_v43 = vpack.c.bf16 %v867_v41, %v864_v40  ;;  %v1411_v49 = vpack.c.bf16 %v866_v47, %v863_v46 }
 0x106   : > { %1352 = vmatpush1.bf16.msra.mxu1 %v1351_v55  ;;  %v869_v55 = vld [vmem:[%s1955_s5 + $0x150] sm:$0xff] }
 0x107   : > { %1384 = vmatpush3.bf16.msra.mxu0 %v1381_v50  ;;  %1386 = vmatprep.subr.bf16.mxu1 %v1385_v56  ;;  %v870_v50 = vld [vmem:[%s1955_s5 + $0x158] sm:$0xff]  ;;  %v1441_v56 = vpack.c.bf16 %v868_v54, %v865_v53  ;;  %v1415_v58 = vpack.c.bf16 %v872_v57, %v869_v55 }
 0x108   : > { %1418 = vmatprep.subr.bf16.mxu0 %v1417_v60  ;;  %v1413_v52 = vpack.c.bf16 %v873_v51, %v870_v50 }
 0x109   : > { %709 = vmatmul.mubr.f32.vlgmr.msra.gmra.mrb[0].mxu1 %v1677_v0  ;;  %v1393_v0 = vpack.c.bf16 %v843_v8, %v840_v6 }
 0x10a   : > { %1252 = vmatmul.mubr.f32.vlgmr.msra.gmra.mrb[2].mxu0 %v412_v1  ;;  %714 = vmatprep.mubr.f32.mxu1 %v1472_v44 }
 0x10b   : > { %1388 = vmatpush1.bf16.msra.mxu1 %v1387_v2  ;;  %1420 = vmatpush3.bf16.msra.mxu0 %v1417_v60  ;;  %v874_v60 = vld [vmem:[%s1955_s5 + $0x178] sm:$0xff] }
 0x10c   : > { %1390 = vmatprep.subr.bf16.mxu1 %v1389_v3  ;;  %1422 = vmatprep.subr.bf16.mxu0 %v1421_v7  ;;  %v1445_v61 = vpack.c.bf16 %v874_v60, %v871_v59 }
 0x10d   : > { %715 = vmatmul.mubr.f32.gmra.mrb[2].mxu1 %v412_v1 }
 0x10e   : > { %939 = vmatprep.mubr.f32.mxu1 %v1472_v44 }
 0x10f   : > { %1392 = vmatpush1.bf16.msra.mxu1 %v1391_v11  ;;  %1424 = vmatpush3.bf16.msra.mxu0 %v1421_v7 }
 0x110   : > { %1394 = vmatprep.subr.bf16.mxu1 %v1393_v0  ;;  %1426 = vmatprep.subr.bf16.mxu0 %v1425_v15 }
 0x113   : > { %1396 = vmatpush1.bf16.msra.mxu1 %v1395_v19  ;;  %1428 = vmatpush3.bf16.msra.mxu0 %v1425_v15  ;;  %v1143_v19 = vld [vmem:[%s1957_s7] ss:$0 sm:$0xff] }
 0x114   : > { %1398 = vmatprep.subr.bf16.mxu1 %v1397_v20  ;;  %1430 = vmatprep.subr.bf16.mxu0 %v1429_v24 }
 0x117   : > { %1400 = vmatpush1.bf16.msra.mxu1 %v1399_v28  ;;  %1432 = vmatpush3.bf16.msra.mxu0 %v1429_v24 }
 0x118   : > { %1402 = vmatprep.subr.bf16.mxu1 %v1401_v29  ;;  %1434 = vmatprep.subr.bf16.mxu0 %v1433_v32 }
 0x11b   : > { %1404 = vmatpush1.bf16.msra.mxu1 %v1403_v35  ;;  %1436 = vmatpush3.bf16.msra.mxu0 %v1433_v32 }
 0x11c   : > { %1406 = vmatprep.subr.bf16.mxu1 %v1405_v36  ;;  %1438 = vmatprep.subr.bf16.mxu0 %v1437_v48 }
 0x11f   : > { %1408 = vmatpush1.bf16.msra.mxu1 %v1407_v39  ;;  %1440 = vmatpush3.bf16.msra.mxu0 %v1437_v48 }
 0x120   : > { %1410 = vmatprep.subr.bf16.mxu1 %v1409_v43  ;;  %1442 = vmatprep.subr.bf16.mxu0 %v1441_v56 }
 0x123   : > { %1412 = vmatpush1.bf16.msra.mxu1 %v1411_v49  ;;  %1444 = vmatpush3.bf16.msra.mxu0 %v1441_v56 }
 0x124   : > { %1414 = vmatprep.subr.bf16.mxu1 %v1413_v52  ;;  %1446 = vmatprep.subr.bf16.mxu0 %v1445_v61 }
 0x127   : > { %1416 = vmatpush1.bf16.msra.mxu1 %v1415_v58  ;;  %1448 = vmatpush3.bf16.msra.mxu0 %v1445_v61 }
 0x1dc   : > { %v710_v63 = vpop.f32.mrb[0].mxu1 }
 0x1dd   : > { %v808_v1 = vrot.slane %v710_v63, 7  ;;  %v712_v2 = vpop.f32.mrb[1].mxu1  ;;  %v1253_v3 = vpop.f32.mrb[2].mxu0 }
 0x1de   : > { %v803_v4 = vadd.f32 %v1142_v62, %v712_v2  ;;  %v820_v5 = vrot.slane %v1253_v3, 1  ;;  %v787_v6 = vpop.f32.mrb[3].mxu0 }
 0x1df   : > { %v813_v7 = vsel %vm807_vm2, 0.0, %v808_v1  ;;  %v819_v8 = vrot.slane %v787_v6, 1 }
 0x1e0   : > { %v814_v9 = vadd.f32 %v813_v7, %v803_v4  ;;  %v716_v10 = vpop.f32.mrb[2].mxu1  ;;  %v824_v17 = vsel %vm818_vm3, %v820_v5, 0.0 }
 0x1e1   : > { %v821_v11 = vsel %vm818_vm3, %v819_v8, %v820_v5  ;;  %v809_v0 = vrot.slane %v716_v10, 7  ;;  %v718_v12 = vpop.f32.mrb[3].mxu1 }
 0x1e2   : > { %v825_v13 = vadd.f32 %v821_v11, %v814_v9  ;;  %v804_v14 = vadd.f32 %v1142_v62, %v718_v12 }
 0x1e3   : > { %v810_v15 = vsel %vm807_vm2, %v808_v1, %v809_v0 }
 0x1e4   : > { %v815_v16 = vadd.f32 %v810_v15, %v804_v14  ;;  %940 = vmatmul.mubr.f32.vlgmr.msra.gmra.mrb[4].mxu1 %v825_v13  ;;  %1286 = vmatprep.mubr.f32.mxu0 %v825_v13 }
 0x1e5   : > { %945 = vmatprep.mubr.f32.mxu1 %v1472_v44 }
 0x1e6   : > { %v826_v18 = vadd.f32 %v824_v17, %v815_v16 }
 0x1e8   : > { %946 = vmatmul.mubr.f32.gmra.mrb[6].mxu1 %v826_v18  ;;  %1287 = vmatmul.mubr.f32.vlgmr.msra.gmra.mrb[4].mxu0 %v826_v18 }
 0x2b7   : > { %v941_v20 = vpop.f32.mrb[4].mxu1 }
 0x2b8   : > { %v1038_v21 = vrot.slane %v941_v20, 7  ;;  %v943_v22 = vpop.f32.mrb[5].mxu1 }
 0x2b9   : > { %v1034_v23 = vadd.f32 %v1143_v19, %v943_v22 }
 0x2ba   : > { %v1043_v24 = vsel %vm807_vm2, 0.0, %v1038_v21 }
 0x2bb   : > { %v1044_v25 = vadd.f32 %v1043_v24, %v1034_v23  ;;  %v947_v26 = vpop.f32.mrb[6].mxu1  ;;  %v1288_v27 = vpop.f32.mrb[4].mxu0 }
 0x2bc   : > { %v1039_v28 = vrot.slane %v947_v26, 7  ;;  %v1049_v29 = vrot.slane %v1288_v27, 1  ;;  %v949_v44 = vpop.f32.mrb[7].mxu1  ;;  %v1018_v30 = vpop.f32.mrb[5].mxu0 }
 0x2bd   : > { %v1035_v31 = vadd.f32 %v1143_v19, %v949_v44  ;;  %v1048_v32 = vrot.slane %v1018_v30, 1 }
 0x2be   : > { %v1040_v33 = vsel %vm807_vm2, %v1038_v21, %v1039_v28  ;;  %v1053_v36 = vsel %vm818_vm3, %v1049_v29, 0.0 }
 0x2bf   : > { %v1045_v34 = vadd.f32 %v1040_v33, %v1035_v31  ;;  %v1050_v35 = vsel %vm818_vm3, %v1048_v32, %v1049_v29 }
 0x2c0   : > { %v1054_v37 = vadd.f32 %v1050_v35, %v1044_v25 }
 0x2c1   : > { %v1055_v38 = vadd.f32 %v1053_v36, %v1045_v34 }
 0x2c2   : > { %1056 = vst [vmem:[%s324_s11] sm:$0xff] %v1054_v37 }
 0x2c3   : > { %1057 = vst [vmem:[%s324_s11 + $0x8] sm:$0xff] %v1055_v38 }
 0x2c4 PF: > { %s18_s27 = sadd.s32 1, %s1470_s27  }
 0x2c5   : > { %p15_p5 = scmp.ge.s32.totalorder %s18_s27, 4  }
 0x2c7   :  { %17 = sbr.rel (!%p15_p5) target bundleno = 1 (0x1), region = 85 }

</bundles_post_ra>
